<compile_context>
chip_gen: v6e
topology: v6e:2x2x1
jax: 0.10.0
libtpu: 0.0.40
codegen_flags: <defaults>
</compile_context>

<pallas_src>
import functools

import jax
import jax.numpy as jnp
from jax.experimental import pallas as pl
from jax.experimental.pallas import tpu as pltpu

SUBLANE = 8  # f32 sublane height; batch tiles kept a multiple of this


def _round_up(n, m):
    return (n + m - 1) // m * m


def mlp_kernel(x_ref, w1_ref, b1_ref, w2_ref, b2_ref, w3_ref, b3_ref, o_ref):
    # x arrives as raw f32 (no wrapper pad/cast pass); cast to bf16 for the MXU here.
    x = x_ref[...].astype(jnp.bfloat16)                                   # (TB, D)

    # fc0: Linear(input, hidden*2) + ReLU  (f32 accumulate; bias/ReLU in f32 on VPU)
    h1 = jnp.dot(x, w1_ref[...], preferred_element_type=jnp.float32) + b1_ref[...]
    h1 = jnp.maximum(h1, 0.0)

    # fc1: Linear(hidden*2, hidden)   (no activation, matches nn.Sequential)
    h2 = jnp.dot(h1.astype(jnp.bfloat16), w2_ref[...],
                 preferred_element_type=jnp.float32) + b2_ref[...]

    # fc2: Linear(hidden, num_classes)
    out = jnp.dot(h2.astype(jnp.bfloat16), w3_ref[...],
                  preferred_element_type=jnp.float32) + b3_ref[...]

    o_ref[...] = out.astype(o_ref.dtype)                                  # (TB, C) store


@functools.partial(jax.jit, static_argnames=("block_b",))
def mymodel_forward(x, params, *, block_b=256):
    """x: (B, D) f32.  params: pre-prepared (bf16 weights, f32 biases) from prepare_params."""
    w1, b1, w2, b2, w3, b3 = params
    B, D = x.shape
    H1, H2, C = w1.shape[1], w2.shape[1], w3.shape[1]

    # Batch tile: big enough to amortize per-grid-step overhead, capped so the grid has
    # at least 2 tiles whenever B allows it (keeps both v7x TensorCores busy).
    TB = min(block_b, max(SUBLANE, _round_up(pl.cdiv(B, 2), SUBLANE)))
    grid = (pl.cdiv(B, TB),)  # ragged final block is masked; compute is row-wise

    # Weights/biases: full-array blocks with a constant index_map -> DMA'd once,
    # resident in VMEM across all batch tiles.
    resident = lambda shape: pl.BlockSpec(shape, lambda i: (0, 0))

    return pl.pallas_call(
        mlp_kernel,
        out_shape=jax.ShapeDtypeStruct((B, C), jnp.float32),
        grid=grid,
        in_specs=[
            pl.BlockSpec((TB, D), lambda i: (i, 0)),    # raw f32 x, tiled over batch
            resident((D, H1)), resident((1, H1)),       # layer 0 weight / bias
            resident((H1, H2)), resident((1, H2)),      # layer 1 weight / bias
            resident((H2, C)), resident((1, C)),        # layer 2 weight / bias
        ],
        out_specs=pl.BlockSpec((TB, C), lambda i: (i, 0)),  # unpadded (B, C) output
        compiler_params=pltpu.CompilerParams(
            dimension_semantics=("parallel",),           # shard batch tiles across TCs (v7x)
        ),
    )(x, w1, b1, w2, b2, w3, b3)


def prepare_params(params):
    """One-time prep outside the jitted forward: cast weights to MXU-native bf16,
    keep biases f32 (VPU bias-add).  Never re-executes per call."""
    w1, b1, w2, b2, w3, b3 = params
    bf = jnp.bfloat16
    f32 = jnp.float32
    return (w1.astype(bf), b1.astype(f32),
            w2.astype(bf), b2.astype(f32),
            w3.astype(bf), b3.astype(f32))


def init_params(key, input_size, hidden_size, num_classes):
    """Deterministic init mimicking nn.Linear's uniform(-1/sqrt(fan_in), 1/sqrt(fan_in)).
    Weights returned already transposed to (in_features, out_features), biases (1, out)."""
    dims = [(input_size, hidden_size * 2),
            (hidden_size * 2, hidden_size),
            (hidden_size, num_classes)]
    params = []
    for fan_in, fan_out in dims:
        key, kw, kb = jax.random.split(key, 3)
        bound = 1.0 / jnp.sqrt(fan_in)
        w = jax.random.uniform(kw, (fan_in, fan_out), jnp.float32, -bound, bound)
        b = jax.random.uniform(kb, (1, fan_out), jnp.float32, -bound, bound)
        params += [w, b]
    return tuple(params)


def reference_forward(x, params):
    """Pure-JAX reference using the same bf16-operand / f32-accumulate recipe."""
    w1, b1, w2, b2, w3, b3 = params
    bf = jnp.bfloat16
    dot = lambda a, b: jnp.dot(a.astype(bf), b.astype(bf),
                               preferred_element_type=jnp.float32)
    h = jnp.maximum(dot(x, w1) + b1, 0.0)
    h = dot(h, w2) + b2
    return dot(h, w3) + b3


if __name__ == "__main__":
    key = jax.random.PRNGKey(0)
    batch, input_size, hidden_size, num_classes = 8, 32, 32, 16

    kx, kp = jax.random.split(key)
    x = jax.random.normal(kx, (batch, input_size), jnp.float32)
    params = init_params(kp, input_size, hidden_size, num_classes)
    kernel_params = prepare_params(params)   # one-time weight cast, outside the jit

    out = mymodel_forward(x, kernel_params)
    jax.block_until_ready(out)

    ref = reference_forward(x, params)
    assert out.shape == (batch, num_classes)
    assert jnp.allclose(out, ref, atol=1e-2, rtol=1e-2), float(jnp.max(jnp.abs(out - ref)))

    print("KERNEL_OK")
</pallas_src>

<mosaic_0001>
module attributes {stable_mosaic.version = 11 : i64} {
  func.func @mlp_kernel(%arg0: i32, %arg1: memref<8x32xf32, #tpu.memory_space<vmem>>, %arg2: memref<32x64xbf16, #tpu.memory_space<vmem>>, %arg3: memref<1x64xf32, #tpu.memory_space<vmem>>, %arg4: memref<64x32xbf16, #tpu.memory_space<vmem>>, %arg5: memref<1x32xf32, #tpu.memory_space<vmem>>, %arg6: memref<32x16xbf16, #tpu.memory_space<vmem>>, %arg7: memref<1x16xf32, #tpu.memory_space<vmem>>, %arg8: memref<8x16xf32, #tpu.memory_space<vmem>>) attributes {dimension_semantics = [#tpu.dimension_semantics<parallel>], iteration_bounds = array<i64: 1>, scalar_prefetch = 0 : i64, scratch_operands = 0 : i64, tpu.core_type = #tpu.core_type<tc>, window_params = [{transform_indices = @transform_0, window_bounds = array<i64: 8, 32>}, {pipeline_mode = #tpu.pipeline_mode<synchronous>, transform_indices = @transform_1, window_bounds = array<i64: 32, 64>}, {pipeline_mode = #tpu.pipeline_mode<synchronous>, transform_indices = @transform_2, window_bounds = array<i64: 1, 64>}, {pipeline_mode = #tpu.pipeline_mode<synchronous>, transform_indices = @transform_3, window_bounds = array<i64: 64, 32>}, {pipeline_mode = #tpu.pipeline_mode<synchronous>, transform_indices = @transform_4, window_bounds = array<i64: 1, 32>}, {pipeline_mode = #tpu.pipeline_mode<synchronous>, transform_indices = @transform_5, window_bounds = array<i64: 32, 16>}, {pipeline_mode = #tpu.pipeline_mode<synchronous>, transform_indices = @transform_6, window_bounds = array<i64: 1, 16>}, {transform_indices = @transform_7, window_bounds = array<i64: 8, 16>}]} {
    %c0 = arith.constant 0 : index
    %c0_0 = arith.constant 0 : index
    %0 = vector.load %arg1[%c0, %c0_0] : memref<8x32xf32, #tpu.memory_space<vmem>>, vector<8x32xf32>
    %1 = arith.truncf %0 : vector<8x32xf32> to vector<8x32xbf16>
    %c0_1 = arith.constant 0 : index
    %c0_2 = arith.constant 0 : index
    %2 = vector.load %arg2[%c0_1, %c0_2] : memref<32x64xbf16, #tpu.memory_space<vmem>>, vector<32x64xbf16>
    %cst = arith.constant dense<0.000000e+00> : vector<8x64xf32>
    %3 = tpu.matmul %1, %2, %cst {dimension_numbers = #tpu.dot_dimension_numbers<[1], [0], [0], [1], [0, 0, 1, 1], [], []>} : vector<8x32xbf16>, vector<32x64xbf16>, vector<8x64xf32> -> vector<8x64xf32>
    %c0_3 = arith.constant 0 : index
    %c0_4 = arith.constant 0 : index
    %4 = vector.load %arg3[%c0_3, %c0_4] : memref<1x64xf32, #tpu.memory_space<vmem>>, vector<1x64xf32>
    %5 = vector.broadcast %4 : vector<1x64xf32> to vector<8x64xf32>
    %6 = arith.addf %3, %5 : vector<8x64xf32>
    %cst_5 = arith.constant 0.000000e+00 : f32
    %7 = vector.broadcast %cst_5 : f32 to vector<8x64xf32>
    %8 = arith.maximumf %6, %7 : vector<8x64xf32>
    %9 = arith.truncf %8 : vector<8x64xf32> to vector<8x64xbf16>
    %c0_6 = arith.constant 0 : index
    %c0_7 = arith.constant 0 : index
    %10 = vector.load %arg4[%c0_6, %c0_7] : memref<64x32xbf16, #tpu.memory_space<vmem>>, vector<64x32xbf16>
    %cst_8 = arith.constant dense<0.000000e+00> : vector<8x32xf32>
    %11 = tpu.matmul %9, %10, %cst_8 {dimension_numbers = #tpu.dot_dimension_numbers<[1], [0], [0], [1], [0, 0, 1, 1], [], []>} : vector<8x64xbf16>, vector<64x32xbf16>, vector<8x32xf32> -> vector<8x32xf32>
    %c0_9 = arith.constant 0 : index
    %c0_10 = arith.constant 0 : index
    %12 = vector.load %arg5[%c0_9, %c0_10] : memref<1x32xf32, #tpu.memory_space<vmem>>, vector<1x32xf32>
    %13 = vector.broadcast %12 : vector<1x32xf32> to vector<8x32xf32>
    %14 = arith.addf %11, %13 : vector<8x32xf32>
    %15 = arith.truncf %14 : vector<8x32xf32> to vector<8x32xbf16>
    %c0_11 = arith.constant 0 : index
    %c0_12 = arith.constant 0 : index
    %16 = vector.load %arg6[%c0_11, %c0_12] : memref<32x16xbf16, #tpu.memory_space<vmem>>, vector<32x16xbf16>
    %cst_13 = arith.constant dense<0.000000e+00> : vector<8x16xf32>
    %17 = tpu.matmul %15, %16, %cst_13 {dimension_numbers = #tpu.dot_dimension_numbers<[1], [0], [0], [1], [0, 0, 1, 1], [], []>} : vector<8x32xbf16>, vector<32x16xbf16>, vector<8x16xf32> -> vector<8x16xf32>
    %c0_14 = arith.constant 0 : index
    %c0_15 = arith.constant 0 : index
    %18 = vector.load %arg7[%c0_14, %c0_15] : memref<1x16xf32, #tpu.memory_space<vmem>>, vector<1x16xf32>
    %19 = vector.broadcast %18 : vector<1x16xf32> to vector<8x16xf32>
    %20 = arith.addf %17, %19 : vector<8x16xf32>
    %c0_16 = arith.constant 0 : index
    %c0_17 = arith.constant 0 : index
    %21 = vector.load %arg8[%c0_16, %c0_17] : memref<8x16xf32, #tpu.memory_space<vmem>>, vector<8x16xf32>
    tpu.vector_store %arg8[%c0_16, %c0_17], %20 {strides = array<i32>} : memref<8x16xf32, #tpu.memory_space<vmem>>, vector<8x16xf32>,
    return
  }
  func.func @transform_0(%arg0: i32) -> (i32, i32) {
    %c0_i32 = arith.constant 0 : i32
    %c0_i32_0 = arith.constant 0 : i32
    return %arg0, %c0_i32 : i32, i32
  }
  func.func @transform_1(%arg0: i32) -> (i32, i32) {
    %c0_i32 = arith.constant 0 : i32
    %c0_i32_0 = arith.constant 0 : i32
    %c0_i32_1 = arith.constant 0 : i32
    return %c0_i32, %c0_i32_0 : i32, i32
  }
  func.func @transform_2(%arg0: i32) -> (i32, i32) {
    %c0_i32 = arith.constant 0 : i32
    %c0_i32_0 = arith.constant 0 : i32
    %c0_i32_1 = arith.constant 0 : i32
    return %c0_i32, %c0_i32_0 : i32, i32
  }
  func.func @transform_3(%arg0: i32) -> (i32, i32) {
    %c0_i32 = arith.constant 0 : i32
    %c0_i32_0 = arith.constant 0 : i32
    %c0_i32_1 = arith.constant 0 : i32
    return %c0_i32, %c0_i32_0 : i32, i32
  }
  func.func @transform_4(%arg0: i32) -> (i32, i32) {
    %c0_i32 = arith.constant 0 : i32
    %c0_i32_0 = arith.constant 0 : i32
    %c0_i32_1 = arith.constant 0 : i32
    return %c0_i32, %c0_i32_0 : i32, i32
  }
  func.func @transform_5(%arg0: i32) -> (i32, i32) {
    %c0_i32 = arith.constant 0 : i32
    %c0_i32_0 = arith.constant 0 : i32
    %c0_i32_1 = arith.constant 0 : i32
    return %c0_i32, %c0_i32_0 : i32, i32
  }
  func.func @transform_6(%arg0: i32) -> (i32, i32) {
    %c0_i32 = arith.constant 0 : i32
    %c0_i32_0 = arith.constant 0 : i32
    %c0_i32_1 = arith.constant 0 : i32
    return %c0_i32, %c0_i32_0 : i32, i32
  }
  func.func @transform_7(%arg0: i32) -> (i32, i32) {
    %c0_i32 = arith.constant 0 : i32
    %c0_i32_0 = arith.constant 0 : i32
    return %arg0, %c0_i32 : i32, i32
  }
}

</mosaic_0001>

<bundles_post_ra>
// kernel: mymodel_forward.1
= control target key start
LH: loop header
LB: loop body
LE: loop exit
PB: predicated region body
PF: predicated region fallthrough
CT: control target
= control target key end

     0   :  { %v351_v1 = vmov 0.0   ;;  %vm352_vm0 = vmmov 0   ;;  %vm53_vm1 = vcmask 261120   ;;  %s438_s0 = inlined_call_operand.vmem [shape: f32[8,32], index: 0, kind: input, shape index: {}]   ;;  %s439_s1 = inlined_call_operand.vmem [shape: bf16[32,64], index: 1, kind: input, shape index: {}]   ;;  %s440_s2 = inlined_call_operand.vmem [shape: f32[1,64], index: 2, kind: input, shape index: {}]   ;;  %s441_s3 = inlined_call_operand.vmem [shape: bf16[64,32], index: 3, kind: input, shape index: {}]   ;;  %s442_s4 = inlined_call_operand.vmem [shape: f32[1,32], index: 4, kind: input, shape index: {}]   ;;  %s443_s5 = inlined_call_operand.vmem [shape: bf16[32,16], index: 5, kind: input, shape index: {}]   ;;  %s444_s6 = inlined_call_operand.vmem [shape: f32[1,16], index: 6, kind: input, shape index: {}]   ;;  %s445_s7 = inlined_call_operand.hbm [shape: f32[8,16], index: 7, kind: output, shape index: {}]  }
   0x1   :  { %v321_v0 = vld [vmem:[%s439_s1 + $0x8] sm:$0xff]   ;;  %290 = vmatprep.subr.bf16.mxu0 %v351_v1  ;;  %v322_v2 = vld [vmem:[%s439_s1] sm:$0xff]   ;;  %298 = vmatprep.subr.bf16.mxu1 %v351_v1  ;;  %v323_v4 = vld [vmem:[%s441_s3 + $0x18] sm:$0xff]  }
   0x2   :  { %291 = vmatpush3.bf16.msra.mxu0 %v321_v0  ;;  %294 = vmatprep.mubr.msk.bf16.mxu0 %vm352_vm0, %v351_v1  ;;  %v28_v3 = vld [vmem:[%s438_s0] sm:$0xff]  ;;  %v324_v5 = vld [vmem:[%s441_s3 + $0x10] sm:$0xff]  }
   0x3   :  { %292 = vmatprep.subr.bf16.mxu0 %v351_v1  ;;  %306 = vmatprep.mubr.msk.bf16.mxu1 %vm352_vm0, %v351_v1  ;;  %v29_v6 = vpack.c.bf16 %v28_v3, %v28_v3 }
   0x4   :  { %299 = vmatpush3.bf16.msra.mxu1 %v323_v4 }
   0x5   :  { %300 = vmatprep.subr.bf16.mxu1 %v351_v1 }
   0x6   :  { %293 = vmatpush3.bf16.msra.mxu0 %v322_v2 }
   0x7   :  { %310 = vmatprep.subr.bf16.mxu0 %v351_v1 }
   0x8   :  { %12 = vsyncpa [#allocation3], 0  ;;  %301 = vmatpush3.bf16.msra.mxu1 %v324_v5  ;;  %v325_v7 = vld [vmem:[%s441_s3 + $0x8] sm:$0xff]   ;;  %v326_v8 = vld [vmem:[%s441_s3] sm:$0xff]   ;;  %vm138_vm2 = vcmask 523264   ;;  %s353_s21 = smov [#allocation2]  }
   0x9   :  { %295 = vmatmul.mubr.msk.bf16.vlgmr.msra.gmra.mxu0 %vm53_vm1, %v29_v6  ;;  %302 = vmatprep.subr.bf16.mxu1 %v351_v1  ;;  %v327_v9 = vld [vmem:[%s443_s5 + $0x8] sm:$0xff]   ;;  %v265_v10 = vld [vmem:[%s440_s2] ss:$0 sm:$0xff]  ;;  %s257_s22 = sshll.u32 %s353_s21, 4  ;;  %vm249_vm3 = vcmask 130048   ;;  %s258_s22 = int_to_ptr.vmem [resolvable:$true] %s257_s22 }
   0xa   :  { %314 = vmatprep.mubr.msk.bf16.mxu0 %vm352_vm0, %v351_v1  ;;  %311 = vmatpush3.bf16.msra.mxu0 %v327_v9  ;;  %v328_v18 = vld [vmem:[%s443_s5] sm:$0xff]   ;;  %p334_p1 = scmp.lt.s32.totalorder %s258_s22, %s258_s22 }
   0xb   :  { %312 = vmatprep.subr.bf16.mxu0 %v351_v1  ;;  %v269_v19 = vld [vmem:[%s442_s4] ss:$0 sm:$0xff]  ;;  %s329_s4 = scalar_lea.vmem %s258_s22, 128 }
   0xc   :  { %303 = vmatpush3.bf16.msra.mxu1 %v325_v7  ;;  %v275_v26 = vld [vmem:[%s444_s6] ss:$0 sm:$0xff]  ;;  %p330_p0 = scmp.ne.s32.totalorder %s258_s22, %s329_s4  ;;  %p335_p2 = scmp.lt.s32.totalorder %s329_s4, %s329_s4 }
   0xd   :  { %304 = vmatprep.subr.bf16.mxu1 %v351_v1 }
   0xe   :  { %313 = vmatpush3.bf16.msra.mxu0 %v328_v18  ;;  %p336_p3 = por %p335_p2, %p334_p1 }
  0x10   :  { %305 = vmatpush3.bf16.msra.mxu1 %v326_v8  ;;  %p337_p4 = pnand %p336_p3, %p330_p0 }
  0xc9   :  { %v91_v11 = vpop.f32.mrf.mxu0 }
  0xca   :  { %v92_v12 = vadd.f32 %v265_v10, %v91_v11 }
  0xcb   :  { %v296_v13 = vpop.f32.mrf.mxu0 }
  0xcc   :  { %v97_v14 = vmax.f32 %v92_v12, 0.0 }
  0xcd   :  { %v94_v15 = vpop.f32.mrf.mxu0 }
  0xce   :  { %v98_v16 = vpack.c.bf16 %v97_v14, %v97_v14 }
  0xcf   :  { %v297_v17 = vpop.f32.mrf.mxu0 }
  0xd0   :  { %307 = vmatmul.mubr.msk.bf16.vlgmr.msra.gmra.mxu1 %vm138_vm2, %v98_v16 }
 0x190   :  { %v176_v20 = vpop.f32.mrf.mxu1 }
 0x191   :  { %v177_v21 = vadd.f32 %v269_v19, %v176_v20 }
 0x192   :  { %v308_v22 = vpop.f32.mrf.mxu1 }
 0x193   :  { %v182_v23 = vpack.c.bf16 %v177_v21, %v177_v21 }
 0x194   :  { %v179_v24 = vpop.f32.mrf.mxu1 }
 0x195   :  { %315 = vmatmul.mubr.msk.bf16.vlgmr.msra.gmra.mxu0 %vm53_vm1, %v182_v23 }
 0x196   :  { %v309_v25 = vpop.f32.mrf.mxu1 }
 0x255   :  { %v243_v27 = vpop.f32.mrf.mxu0 }
 0x256   :  { %v244_v28 = vadd.f32 %v275_v26, %v243_v27 }
 0x257   :  { %v316_v29 = vpop.f32.mrf.mxu0 }
 0x258   :  { %250 = vst.msk [vmem:[#allocation2] sm:$0xff] %vm249_vm3, %v244_v28 }
 0x259   :  { %v246_v30 = vpop.f32.mrf.mxu0 }
 0x25a   :  { %340 = shalt.err (!%p337_p4)
}
 0x25b   :  { %260 = dma.vmem_to_hbm [thread:$0]  %s258_s22, 128, %s445_s7, [#allocation3]   ;;  %v317_v31 = vpop.f32.mrf.mxu0 }
 0x25c   :  { %349 = dma.done.wait [#allocation3], 128  }
 0x25d   :  { %350 = vsyncadd [#allocation3], 4294967168 }
 0x25e   :  { %264 = vsyncpa [#allocation3], 1 }

</bundles_post_ra>
